<compile_context>
chip_gen: v6e
topology: v6e:2x2x1
jax: 0.10.0
libtpu: 0.0.40
codegen_flags: <defaults>
</compile_context>

<pallas_src>
import functools
import math

import jax
import jax.numpy as jnp
from jax import lax
from jax.experimental import pallas as pl
from jax.experimental.pallas import tpu as pltpu


# --------------------------------------------------------------------------
# Reference buffer (faithful to PositionalEncoding.__init__) — used only for
# the correctness check in __main__; the kernel generates pe on the fly.
# --------------------------------------------------------------------------
def make_pe_buffer(d_model: int, max_len: int = 100000) -> jnp.ndarray:
    position = jnp.arange(max_len, dtype=jnp.float32)[:, None]            # [L, 1]
    div_term = jnp.exp(
        jnp.arange(0, d_model, 2, dtype=jnp.float32)
        * (-math.log(10000.0) / d_model)
    )                                                                      # [D/2]
    angles = position * div_term                                           # [L, D/2]
    pe = jnp.zeros((max_len, 1, d_model), dtype=jnp.float32)
    pe = pe.at[:, 0, 0::2].set(jnp.sin(angles))
    pe = pe.at[:, 0, 1::2].set(jnp.cos(angles))
    return pe


# --------------------------------------------------------------------------
# VMEM-aware tile sizing
# --------------------------------------------------------------------------
_TILE_BYTES_BUDGET = 16 * 1024 * 1024   # ~4 double-buffered row tiles (x in + out)
_VMEM_LIMIT_BYTES = 32 * 1024 * 1024    # safe on v5e/v6e (128 MiB) and v7x (64 MiB)


def _pick_tile_rows(n_rows: int, d: int, itemsize: int,
                    budget_bytes: int = _TILE_BYTES_BUDGET) -> int:
    """Largest multiple-of-8 row tile that divides n_rows and fits the budget."""
    if n_rows % 8 != 0:
        # TODO(synk): ragged row counts fall back to a single full block; a
        # cdiv grid with a masked last block would tile these too.
        return n_rows
    bytes_per_row = d * itemsize
    max_tr = max(8, budget_bytes // (4 * bytes_per_row))   # 2x in + 2x out buffers
    max_tr = (max_tr // 8) * 8
    tr = min(n_rows, max_tr)
    while n_rows % tr != 0:        # terminates: tr=8 always divides n_rows here
        tr -= 8
    return tr


# --------------------------------------------------------------------------
# Pallas kernel: y = dropout(x + pe(pos, lane))   (elementwise, mem-bound)
# --------------------------------------------------------------------------
def _pe_kernel(seed_ref, pos_ref, freq_ref, x_ref, o_ref, *,
               dropout_p: float, training: bool):
    # pos_ref:  (tr, 1) f32  — sequence position of each flattened row
    # freq_ref: (1, d)  f32  — div_term duplicated per lane (freq[d] = div_term[d//2])
    # x_ref:    (tr, d)       — lane-dense input tile
    tr, d = x_ref.shape
    cols = lax.broadcasted_iota(jnp.int32, (tr, d), 1)

    # pe[pos, d] = sin(pos * freq[d]) for even d, cos(...) for odd d  (EUP work,
    # free relative to the HBM bottleneck; no pe bytes ever leave HBM).
    angle = pos_ref[...] * freq_ref[...]                  # (tr,1)*(1,d) -> (tr,d)
    pe = jnp.where((cols & 1) == 0, jnp.sin(angle), jnp.cos(angle))

    y = x_ref[...].astype(jnp.float32) + pe

    if training and dropout_p > 0.0:
        # Inverted dropout with a counter-based hash RNG (lowbias32).
        # Keyed on (seed, global element index) -> mask is independent of the
        # tile size / grid partitioning and safe under "parallel" semantics.
        # TODO(synk): PRNG stream differs from torch's nn.Dropout; only the
        # statistics (P(drop)=p, scale 1/(1-p)) match.
        seed = seed_ref[0].astype(jnp.uint32)
        r0 = pl.program_id(0) * tr
        rows = r0 + lax.broadcasted_iota(jnp.int32, (tr, d), 0)
        idx = (rows * d + cols).astype(jnp.uint32)
        h = idx ^ (seed * jnp.uint32(0x9E3779B9))
        h = h ^ (h >> 16)
        h = h * jnp.uint32(0x7FEB352D)
        h = h ^ (h >> 15)
        h = h * jnp.uint32(0x846CA68B)
        h = h ^ (h >> 16)
        # Integer threshold compare (no float conversion); use 31 bits so the
        # comparison is a plain signed int32 compare.
        u31 = (h >> 1).astype(jnp.int32)
        thr = jnp.int32(min(int(round(dropout_p * 2147483648.0)), 2147483647))
        keep = u31 >= thr
        scale = jnp.float32(1.0 / (1.0 - dropout_p))
        y = jnp.where(keep, y * scale, jnp.float32(0.0))

    o_ref[...] = y.astype(o_ref.dtype)


# --------------------------------------------------------------------------
# Wrapper
# --------------------------------------------------------------------------
def positional_encoding_forward(
    x: jnp.ndarray,          # [S, B, D]
    *,
    dropout_p: float = 0.1,
    training: bool = False,
    seed: int = 0,
    max_len: int = 100000,
    tile_rows: int | None = None,
) -> jnp.ndarray:
    S, B, D = x.shape
    assert S <= max_len, "sequence longer than max_len"
    assert D % 2 == 0, "d_model must be even (as in the PyTorch module)"

    R = S * B
    x2d = x.reshape(R, D)                                  # contiguous -> free reshape

    # freq[d] = exp(-(d - d%2) * ln(10000)/D)  == div_term[d//2], duplicated per lane.
    d_idx = jnp.arange(D, dtype=jnp.float32)
    d_even = d_idx - jnp.mod(d_idx, 2.0)
    inv_freq = jnp.exp(d_even * (-math.log(10000.0) / D)).reshape(1, D)

    # Sequence position of each flattened row (row = s*B + b -> pos = s).
    # f32 is exact for positions < 2^24 (max_len default 1e5).
    pos = jnp.repeat(jnp.arange(S, dtype=jnp.float32), B).reshape(R, 1)

    tr = tile_rows if tile_rows is not None else _pick_tile_rows(
        R, D, jnp.dtype(x.dtype).itemsize)
    assert R % tr == 0
    grid = (R // tr,)

    kernel = functools.partial(
        _pe_kernel, dropout_p=float(dropout_p), training=bool(training))
    seed_arr = jnp.array([seed], dtype=jnp.int32)

    out2d = pl.pallas_call(
        kernel,
        out_shape=jax.ShapeDtypeStruct((R, D), x.dtype),
        grid_spec=pltpu.PrefetchScalarGridSpec(
            num_scalar_prefetch=1,
            grid=grid,
            in_specs=[
                pl.BlockSpec((tr, 1), lambda i, seed: (i, 0)),   # positions
                pl.BlockSpec((1, D), lambda i, seed: (0, 0)),    # per-lane freqs
                pl.BlockSpec((tr, D), lambda i, seed: (i, 0)),   # x rows
            ],
            out_specs=pl.BlockSpec((tr, D), lambda i, seed: (i, 0)),
        ),
        compiler_params=pltpu.CompilerParams(
            # Tiles are independent (dropout mask keyed on global index), so the
            # grid axis can shard across v7x's two TensorCores.
            dimension_semantics=("parallel",),
            vmem_limit_bytes=_VMEM_LIMIT_BYTES,
        ),
    )(seed_arr, pos, inv_freq, x2d)

    return out2d.reshape(S, B, D)


# --------------------------------------------------------------------------
# Demo / self-check
# --------------------------------------------------------------------------
if __name__ == "__main__":
    SEQ, BATCH, D_MODEL = 8, 2, 32
    MAX_LEN = 1024   # module default is 100000; smaller here for the demo buffer

    key = jax.random.PRNGKey(0)
    x = jax.random.normal(key, (SEQ, BATCH, D_MODEL), dtype=jnp.float32)

    pe_buf = make_pe_buffer(D_MODEL, MAX_LEN)
    ref = x + pe_buf[:SEQ]                                  # eval-mode reference

    # Eval mode: dropout is identity -> exact elementwise check.
    out_eval = positional_encoding_forward(
        x, dropout_p=0.1, training=False, max_len=MAX_LEN)
    out_eval = jax.block_until_ready(out_eval)
    assert out_eval.shape == (SEQ, BATCH, D_MODEL)
    assert jnp.allclose(out_eval, ref, atol=5e-5, rtol=1e-5), "eval-mode mismatch"

    # Training mode: inverted dropout. Check statistics and that kept values
    # are exactly the reference scaled by 1/(1-p).
    p = 0.1
    out_train = positional_encoding_forward(
        x, dropout_p=p, training=True, seed=123, max_len=MAX_LEN)
    out_train = jax.block_until_ready(out_train)
    assert out_train.shape == (SEQ, BATCH, D_MODEL)
    kept = jnp.abs(out_train) > 0
    frac_kept = jnp.mean(kept.astype(jnp.float32))
    assert 0.75 < float(frac_kept) < 1.0, f"implausible keep fraction {frac_kept}"
    assert jnp.allclose(
        jnp.where(kept, out_train, 0.0),
        jnp.where(kept, ref / (1.0 - p), 0.0),
        atol=1e-4, rtol=1e-4,
    ), "kept values do not match scaled reference"

    print("KERNEL_OK")
</pallas_src>

<mosaic_0001>
module attributes {stable_mosaic.version = 11 : i64} {
  func.func @_pe_kernel(%arg0: i32, %arg1: memref<1xi32, #tpu.memory_space<smem>>, %arg2: memref<16x1xf32, #tpu.memory_space<vmem>>, %arg3: memref<1x32xf32, #tpu.memory_space<vmem>>, %arg4: memref<16x32xf32, #tpu.memory_space<vmem>>, %arg5: memref<16x32xf32, #tpu.memory_space<vmem>>) attributes {dimension_semantics = [#tpu.dimension_semantics<parallel>], iteration_bounds = array<i64: 1>, scalar_prefetch = 1 : i64, scratch_operands = 0 : i64, tpu.core_type = #tpu.core_type<tc>, window_params = [{transform_indices = @transform_0, window_bounds = array<i64: 16, 1>}, {pipeline_mode = #tpu.pipeline_mode<synchronous>, transform_indices = @transform_1, window_bounds = array<i64: 1, 32>}, {transform_indices = @transform_2, window_bounds = array<i64: 16, 32>}, {transform_indices = @transform_3, window_bounds = array<i64: 16, 32>}]} {
    %0 = tpu.iota {dimensions = array<i32: 1>} : vector<16x32xi32>
    %c0 = arith.constant 0 : index
    %c0_0 = arith.constant 0 : index
    %1 = vector.load %arg2[%c0, %c0_0] : memref<16x1xf32, #tpu.memory_space<vmem>>, vector<16x1xf32>
    %c0_1 = arith.constant 0 : index
    %c0_2 = arith.constant 0 : index
    %2 = vector.load %arg3[%c0_1, %c0_2] : memref<1x32xf32, #tpu.memory_space<vmem>>, vector<1x32xf32>
    %3 = vector.broadcast %1 : vector<16x1xf32> to vector<16x32xf32>
    %4 = vector.broadcast %2 : vector<1x32xf32> to vector<16x32xf32>
    %5 = arith.mulf %3, %4 : vector<16x32xf32>
    %c1_i32 = arith.constant 1 : i32
    %6 = vector.broadcast %c1_i32 : i32 to vector<16x32xi32>
    %7 = arith.andi %0, %6 : vector<16x32xi32>
    %c0_i32 = arith.constant 0 : i32
    %8 = vector.broadcast %c0_i32 : i32 to vector<16x32xi32>
    %9 = arith.cmpi eq, %7, %8 : vector<16x32xi32>
    %10 = math.sin %5 : vector<16x32xf32>
    %11 = math.cos %5 : vector<16x32xf32>
    %12 = arith.select %9, %10, %11 : vector<16x32xi1>, vector<16x32xf32>
    %c0_3 = arith.constant 0 : index
    %c0_4 = arith.constant 0 : index
    %13 = vector.load %arg4[%c0_3, %c0_4] : memref<16x32xf32, #tpu.memory_space<vmem>>, vector<16x32xf32>
    %14 = arith.addf %13, %12 : vector<16x32xf32>
    %c0_5 = arith.constant 0 : index
    %c0_6 = arith.constant 0 : index
    %15 = vector.load %arg5[%c0_5, %c0_6] : memref<16x32xf32, #tpu.memory_space<vmem>>, vector<16x32xf32>
    tpu.vector_store %arg5[%c0_5, %c0_6], %14 {strides = array<i32>} : memref<16x32xf32, #tpu.memory_space<vmem>>, vector<16x32xf32>,
    return
  }
  func.func @transform_0(%arg0: i32, %arg1: memref<1xi32, #tpu.memory_space<smem>>) -> (i32, i32) {
    %c0_i32 = arith.constant 0 : i32
    %c0_i32_0 = arith.constant 0 : i32
    return %arg0, %c0_i32 : i32, i32
  }
  func.func @transform_1(%arg0: i32, %arg1: memref<1xi32, #tpu.memory_space<smem>>) -> (i32, i32) {
    %c0_i32 = arith.constant 0 : i32
    %c0_i32_0 = arith.constant 0 : i32
    %c0_i32_1 = arith.constant 0 : i32
    return %c0_i32, %c0_i32_0 : i32, i32
  }
  func.func @transform_2(%arg0: i32, %arg1: memref<1xi32, #tpu.memory_space<smem>>) -> (i32, i32) {
    %c0_i32 = arith.constant 0 : i32
    %c0_i32_0 = arith.constant 0 : i32
    return %arg0, %c0_i32 : i32, i32
  }
  func.func @transform_3(%arg0: i32, %arg1: memref<1xi32, #tpu.memory_space<smem>>) -> (i32, i32) {
    %c0_i32 = arith.constant 0 : i32
    %c0_i32_0 = arith.constant 0 : i32
    return %arg0, %c0_i32 : i32, i32
  }
}

</mosaic_0001>

<bundles_post_ra>
// kernel: tpu_custom_call.1
= control target key start
LH: loop header
LB: loop body
LE: loop exit
PB: predicated region body
PF: predicated region fallthrough
CT: control target
= control target key end

     0   :  { %v547_v1 = vmov 0   ;;  %s670_s0 = inlined_call_operand.<no memory space> [shape: s32[1], index: 0, kind: input, shape index: {}]   ;;  %s671_s1 = inlined_call_operand.vmem [shape: f32[16,1], index: 1, kind: input, shape index: {}]   ;;  %s672_s2 = inlined_call_operand.vmem [shape: f32[1,32], index: 2, kind: input, shape index: {}]   ;;  %s673_s3 = inlined_call_operand.vmem [shape: f32[16,32], index: 3, kind: input, shape index: {}]   ;;  %s674_s4 = inlined_call_operand.hbm [shape: f32[16,32], index: 4, kind: output, shape index: {}]  }
   0x1   :  { %v19_v0 = vld [vmem:[%s671_s1] sm:$0xff]  ;;  %516 = vset.pattern.permute.xlu0 %v547_v1  ;;  %v20_v2 = vld [vmem:[%s671_s1 + $0x8] sm:$0xff] }
   0x2   :  { %24 = vperm.xlu0 %516, %v19_v0  }
   0x3   :  { %10 = vsyncpa [#allocation5], 0  ;;  %v481_v3 = vld [vmem:[%s672_s2] ss:$0 sm:$0xff]  ;;  %v548_v24 = vmov 683565275  }
   0x4   :  { %v549_v28 = vmov 2475754826   ;;  %v550_v30 = vmov 2131351028   ;;  %v551_v32 = vmov 2102212464  }
   0x5   :  { %v552_v34 = vmov 920167782   ;;  %v553_v41 = vmov 1326507024   ;;  %s554_s22 = smov [#allocation4]  }
   0x6   :  { %29 = vperm.xlu0 %516, %v20_v2   ;;  %s470_s23 = sshll.u32 %s554_s22, 4  ;;  %s471_s23 = int_to_ptr.vmem [resolvable:$true] %s470_s23 }
   0x7   :  { %s525_s24 = scalar_lea.vmem %s471_s23, 256  ;;  %p530_p1 = scmp.lt.s32.totalorder %s471_s23, %s471_s23 }
   0x8   :  { %p526_p0 = scmp.ne.s32.totalorder %s471_s23, %s525_s24  ;;  %p531_p2 = scmp.lt.s32.totalorder %s525_s24, %s525_s24 }
   0xa   :  { %p532_p3 = por %p531_p2, %p530_p1 }
   0xc   :  { %p533_p4 = pnand %p532_p3, %p526_p0 }
  0x7d   :  { %v25_v4 = vpop.permute.xlu0 %24 }
  0x7e   :  { %v591_v5 = vmul.f32 %v481_v3, %v25_v4 }
  0x80   :  { %v42_v6 = vand.u32 2147483647, %v591_v5  ;;  %v45_v7 = vand.u32 2139095040, %v591_v5  ;;  %vm44_vm14 = vcmp.lt.s32.totalorder %v591_v5, 0 }
  0x81   :  { %v30_v8 = vpop.permute.xlu0 %29 }
  0x82   :  { %v46_v9 = vshrl.u32 %v45_v7, 23  ;;  %v595_v10 = vmul.f32 %v481_v3, %v30_v8  ;;  %v49_v11 = vand.u32 8388607, %v42_v6  ;;  %vm43_vm15 = vcmp.le.f32.partialorder %v42_v6, 0.7853982 }
  0x84   :  { %v482_v12 = vadd.s32 4294967169, %v46_v9  ;;  %v149_v13 = vand.u32 2139095040, %v595_v10  ;;  %v50_v15 = vor.u32 8388608, %v49_v11  ;;  %v146_v17 = vand.u32 2147483647, %v595_v10 }
  0x86   :  { %v52_v14 = vadd.s32 1, %v482_v12  ;;  %v150_v16 = vshrl.u32 %v149_v13, 23  ;;  %v601_v22 = vshll.u32 %v50_v15, 8  ;;  %v153_v26 = vand.u32 8388607, %v146_v17 }
  0x88   :  { %vm53_vm0 = vcmp.gt.s32.totalorder %v52_v14, 0  ;;  %v486_v19 = vadd.s32 4294967169, %v150_v16  ;;  %v154_v56 = vor.u32 8388608, %v153_v26 }
  0x89   :  { %v54_v18 = vsel %vm53_vm0, %v52_v14, 0  ;;  %vm148_vm0 = vcmp.lt.s32.totalorder %v595_v10, 0 }
  0x8a   :  { %v55_v20 = vshrl.u32 %v54_v18, 5  ;;  %v56_v21 = vand.u32 31, %v54_v18  ;;  %v156_v27 = vadd.s32 1, %v486_v19  ;;  %v194_v7 = vshll.u32 %v154_v56, 8 }
  0x8c   :  { %v57_v23 = vsub.s32 32, %v56_v21  ;;  %v59_v25 = vshll.u32 %v548_v24, %v56_v21  ;;  %v62_v29 = vshll.u32 %v549_v28, %v56_v21  ;;  %v65_v31 = vshll.u32 %v550_v30, %v56_v21 }
  0x8d   :  { %v68_v33 = vshll.u32 %v551_v32, %v56_v21  ;;  %v71_v35 = vshll.u32 %v552_v34, %v56_v21  ;;  %vm74_vm1 = vcmp.lt.s32.totalorder %v55_v20, 1  ;;  %vm76_vm2 = vcmp.lt.s32.totalorder %v55_v20, 3 }
  0x8e   :  { %v60_v36 = vshrl.u32 %v549_v28, %v57_v23  ;;  %v63_v37 = vshrl.u32 %v550_v30, %v57_v23  ;;  %v66_v38 = vshrl.u32 %v551_v32, %v57_v23  ;;  %v58_v39 = vshrl.u32 %v548_v24, %v57_v23 }
  0x8f   :  { %v69_v40 = vshrl.u32 %v552_v34, %v57_v23  ;;  %v72_v42 = vshrl.u32 %v553_v41, %v57_v23  ;;  %vm157_vm3 = vcmp.gt.s32.totalorder %v156_v27, 0  ;;  %vm77_vm4 = vcmp.lt.s32.totalorder %v55_v20, 4 }
  0x90   :  { %v61_v43 = vor.u32 %v60_v36, %v59_v25  ;;  %v64_v44 = vor.u32 %v63_v37, %v62_v29  ;;  %v67_v45 = vor.u32 %v66_v38, %v65_v31  ;;  %v158_v48 = vsel %vm157_vm3, %v156_v27, 0 }
  0x91   :  { %v70_v46 = vor.u32 %v69_v40, %v68_v33  ;;  %v73_v47 = vor.u32 %v72_v42, %v71_v35  ;;  %vm75_vm5 = vcmp.lt.s32.totalorder %v55_v20, 2  ;;  %v160_v59 = vand.u32 31, %v158_v48 }
  0x92   :  { %v78_v49 = vsel %vm74_vm1, %v58_v39, %v61_v43  ;;  %v79_v50 = vsel %vm77_vm4, %v67_v45, 2102212464  ;;  %v82_v51 = vsel %vm74_vm1, %v61_v43, %v64_v44  ;;  %v86_v52 = vsel %vm74_vm1, %v64_v44, %v67_v45 }
  0x93   :  { %v80_v53 = vsel %vm76_vm2, %v64_v44, %v79_v50  ;;  %v83_v54 = vsel %vm77_vm4, %v70_v46, 920167782  ;;  %v87_v55 = vsel %vm77_vm4, %v73_v47, 1326507024  ;;  %v159_v3 = vshrl.u32 %v158_v48, 5 }
  0x94   :  { %v84_v57 = vsel %vm76_vm2, %v67_v45, %v83_v54  ;;  %v88_v58 = vsel %vm76_vm2, %v70_v46, %v87_v55  ;;  %v81_v60 = vsel %vm75_vm5, %v78_v49, %v80_v53  ;;  %v161_v4 = vsub.s32 32, %v160_v59 }
  0x95   :  { %v85_v61 = vsel %vm75_vm5, %v82_v51, %v84_v57  ;;  %v89_v62 = vsel %vm75_vm5, %v86_v52, %v88_v58  ;;  %v97_v8 = vmul.u32 %v601_v22, %v81_v60  ;;  %v163_v9 = vshll.u32 %v548_v24, %v160_v59 }
  0x96   :  { %v614_v63 = vmul.u32.u64.low %v601_v22, %v89_v62  ;;  %v615_v0 = vmul.u32.u64.high %v601_v22, %v89_v62, %v614_v63  ;;  %v618_v1 = vmul.u32.u64.low %v601_v22, %v85_v61  ;;  %v619_v2 = vmul.u32.u64.high %v601_v22, %v85_v61, %v618_v1 }
  0x97   :  { %v166_v11 = vshll.u32 %v549_v28, %v160_v59  ;;  %v169_v12 = vshll.u32 %v550_v30, %v160_v59  ;;  %v164_v13 = vshrl.u32 %v549_v28, %v161_v4  ;;  %v167_v14 = vshrl.u32 %v550_v30, %v161_v4 }
  0x98   :  { %v170_v15 = vshrl.u32 %v551_v32, %v161_v4  ;;  %v172_v16 = vshll.u32 %v551_v32, %v160_v59  ;;  %vm99_vm6 = vc.u32 %v615_v0, %v618_v1  ;;  %v100_v18 = vadd.s32 1, %v619_v2 }
  0x99   :  { %v173_v19 = vshrl.u32 %v552_v34, %v161_v4  ;;  %v175_v20 = vshll.u32 %v552_v34, %v160_v59  ;;  %v165_v21 = vor.u32 %v164_v13, %v163_v9  ;;  %v168_v23 = vor.u32 %v167_v14, %v166_v11 }
  0x9a   :  { %v171_v25 = vor.u32 %v170_v15, %v169_v12  ;;  %v176_v26 = vshrl.u32 %v553_v41, %v161_v4  ;;  %v101_v22 = vsel %vm99_vm6, %v100_v18, %v619_v2  ;;  %vm178_vm7 = vcmp.lt.s32.totalorder %v159_v3, 1 }
  0x9b   :  { %v174_v27 = vor.u32 %v173_v19, %v172_v16  ;;  %vm181_vm8 = vcmp.lt.s32.totalorder %v159_v3, 4  ;;  %v102_v28 = vadd.s32 %v101_v22, %v97_v8  ;;  %vm180_vm9 = vcmp.lt.s32.totalorder %v159_v3, 3 }
  0x9c   :  { %v177_v29 = vor.u32 %v176_v26, %v175_v20  ;;  %v183_v30 = vsel %vm181_vm8, %v171_v25, 2102212464  ;;  %v162_v31 = vshrl.u32 %v548_v24, %v161_v4  ;;  %v186_v32 = vsel %vm178_vm7, %v165_v21, %v168_v23 }
  0x9d   :  { %v187_v33 = vsel %vm181_vm8, %v174_v27, 920167782  ;;  %v190_v35 = vsel %vm178_vm7, %v168_v23, %v171_v25  ;;  %v103_v36 = vadd.s32 536870912, %v102_v28  ;;  %vm179_vm10 = vcmp.lt.s32.totalorder %v159_v3, 2 }
  0x9e   :  { %v188_v34 = vsel %vm180_vm9, %v171_v25, %v187_v33  ;;  %v191_v37 = vsel %vm181_vm8, %v177_v29, 1326507024  ;;  %v182_v38 = vsel %vm178_vm7, %v162_v31, %v165_v21  ;;  %v184_v39 = vsel %vm180_vm9, %v168_v23, %v183_v30 }
  0x9f   :  { %v189_v40 = vsel %vm179_vm10, %v186_v32, %v188_v34  ;;  %v192_v41 = vsel %vm180_vm9, %v174_v27, %v191_v37  ;;  %v104_v42 = vshrl.u32 %v103_v36, 30  ;;  %v185_v48 = vsel %vm179_vm10, %v182_v38, %v184_v39 }
  0xa0   :  { %v193_v43 = vsel %vm179_vm10, %v190_v35, %v192_v41  ;;  %v629_v44 = vmul.u32.u64.low %v194_v7, %v189_v40  ;;  %v630_v45 = vmul.u32.u64.high %v194_v7, %v189_v40, %v629_v44  ;;  %v201_v51 = vmul.u32 %v194_v7, %v185_v48 }
  0xa1   :  { %v632_v46 = vmul.u32.u64.low %v194_v7, %v193_v43  ;;  %v633_v47 = vmul.u32.u64.high %v194_v7, %v193_v43, %v632_v46  ;;  %v105_v24 = vshll.u32 %v104_v42, 30  ;;  %v98_v63 = vadd.s32 %v618_v1, %v615_v0 }
  0xa2   :  { %v204_v50 = vadd.s32 1, %v630_v45  ;;  %v128_v26 = vsub.s32 4, %v104_v42  ;;  %v17_v36 = vlaneseq  ;;  %vm147_vm1 = vcmp.le.f32.partialorder %v146_v17, 0.7853982 }
  0xa3   :  { %v106_v49 = vsub.s32 %v102_v28, %v105_v24  ;;  %vm203_vm11 = vc.u32 %v633_v47, %v629_v44  ;;  %v202_v23 = vadd.s32 %v629_v44, %v633_v47  ;;  %vm134_vm9 = vweird.f32 %v591_v5 }
  0xa4   :  { %v205_v53 = vsel %vm203_vm11, %v204_v50, %v630_v45  ;;  %v129_v33 = vsel %vm44_vm14, %v128_v26, %v104_v42  ;;  %v18_v40 = vand.u32 127, %v17_v36  ;;  %vm462_vm10 = vcmask 261120  }
  0xa5   :  { %v108_v52 = vsub.s32 0, %v106_v49  ;;  %v206_v54 = vadd.s32 %v205_v53, %v201_v51  ;;  %v131_v38 = vsel %vm43_vm15, 0, %v129_v33 }
  0xa6   :  { %v135_v41 = vadd.s32 3, %v131_v38  ;;  %v40_v42 = vand.u32 1, %v18_v40  ;;  %v343_v47 = vand.u32 3, %v131_v38 }
  0xa7   :  { %v483_v55 = vmin.u32 %v108_v52, %v106_v49  ;;  %v207_v56 = vadd.s32 536870912, %v206_v54 }
  0xa8   :  { %v136_v46 = vand.u32 3, %v135_v41  ;;  %vm649_vm2 = vcmp.eq.s32.totalorder %v40_v42, 0  ;;  %vm348_vm4 = vcmp.eq.s32.totalorder %v343_v47, 2  ;;  %vm345_vm6 = vcmp.eq.s32.totalorder %v343_v47, 0 }
  0xa9   :  { %v110_v57 = vclz %v483_v55  ;;  %v208_v58 = vshrl.u32 %v207_v56, 30  ;;  %vm344_vm8 = vcmp.lt.s32.totalorder %v343_v47, 2 }
  0xaa   :  { %vm141_vm3 = vcmp.eq.s32.totalorder %v136_v46, 2  ;;  %vm138_vm5 = vcmp.eq.s32.totalorder %v136_v46, 0  ;;  %vm137_vm7 = vcmp.lt.s32.totalorder %v136_v46, 2 }
  0xab   :  { %v484_v59 = vadd.s32 4294967294, %v110_v57  ;;  %v209_v60 = vshll.u32 %v208_v58, 30  ;;  %v232_v6 = vsub.s32 4, %v208_v58 }
  0xad   :  { %vm485_vm12 = vcmp.lt.s32.totalorder %v484_v59, 0  ;;  %v210_v62 = vsub.s32 %v206_v54, %v209_v60  ;;  %v233_v24 = vsel %vm148_vm0, %v232_v6, %v208_v58  ;;  %v458_v60 = vld [vmem:[%s673_s3] sm:$0xff] }
  0xae   :  { %v113_v61 = vsel %vm485_vm12, 0, %v484_v59  ;;  %v235_v52 = vsel %vm147_vm1, 0, %v233_v24 }
  0xaf   :  { %v114_v2 = vsub.s32 32, %v113_v61  ;;  %v118_v3 = vsub.s32 4294967266, %v113_v61  ;;  %v212_v4 = vsub.s32 0, %v210_v62  ;;  %v115_v7 = vshll.u32 %v106_v49, %v113_v61 }
  0xb0   :  { %v239_v57 = vadd.s32 3, %v235_v52 }
  0xb1   :  { %v116_v8 = vshrl.u32 %v98_v63, %v114_v2  ;;  %v119_v9 = vadd.s32 127, %v118_v3  ;;  %v487_v11 = vmin.u32 %v212_v4, %v210_v62  ;;  %v446_v4 = vand.u32 3, %v235_v52 }
  0xb2   :  { %v240_v3 = vand.u32 3, %v239_v57 }
  0xb3   :  { %v117_v12 = vor.u32 %v116_v8, %v115_v7  ;;  %v120_v13 = vshll.u32 %v119_v9, 23  ;;  %v214_v14 = vclz %v487_v11  ;;  %vm451_vm12 = vcmp.eq.s32.totalorder %v446_v4, 2 }
  0xb4   :  { %vm245_vm11 = vcmp.eq.s32.totalorder %v240_v3, 2 }
  0xb5   :  { %v121_v15 = vor.u32 4788187, %v120_v13  ;;  %v488_v16 = vadd.s32 4294967294, %v214_v14  ;;  %v124_v19 = vcvt.s32.f32 %v117_v12 }
  0xb7   :  { %v122_v18 = vand.u32 2147483647, %v121_v15  ;;  %vm489_vm13 = vcmp.lt.s32.totalorder %v488_v16, 0 }
  0xb8   :  { %v217_v21 = vsel %vm489_vm13, 0, %v488_v16  ;;  %vm242_vm13 = vcmp.eq.s32.totalorder %v240_v3, 0 }
  0xb9   :  { %v125_v20 = vmul.f32 %v124_v19, %v122_v18  ;;  %v218_v0 = vsub.s32 32, %v217_v21  ;;  %v222_v1 = vsub.s32 4294967266, %v217_v21  ;;  %v219_v22 = vshll.u32 %v210_v62, %v217_v21  ;;  %v459_v18 = vld [vmem:[%s673_s3 + $0x8] sm:$0xff] }
  0xbb   :  { %v126_v25 = vxor.u32 2147483648, %v125_v20  ;;  %v220_v27 = vshrl.u32 %v202_v23, %v218_v0  ;;  %v223_v28 = vadd.s32 127, %v222_v1 }
  0xbd   :  { %v127_v29 = vsel %vm44_vm14, %v126_v25, %v125_v20  ;;  %v221_v31 = vor.u32 %v220_v27, %v219_v22  ;;  %v224_v32 = vshll.u32 %v223_v28, 23  ;;  %vm448_vm14 = vcmp.eq.s32.totalorder %v446_v4, 0 }
  0xbe   :  { %v130_v30 = vsel %vm43_vm15, %v591_v5, %v127_v29  ;;  %vm241_vm15 = vcmp.lt.s32.totalorder %v240_v3, 2 }
  0xbf   :  { %517 = vcosq.f32 %v130_v30  ;;  %v225_v35 = vor.u32 4788187, %v224_v32  ;;  %v228_v37 = vcvt.s32.f32 %v221_v31 }
  0xc0   :  { %519 = vsinq.f32 %v130_v30 }
  0xc1   :  { %v226_v34 = vand.u32 2147483647, %v225_v35 }
  0xc3   :  { %v229_v39 = vmul.f32 %v228_v37, %v226_v34 }
  0xc5   :  { %v230_v43 = vxor.u32 2147483648, %v229_v39 }
  0xc7   :  { %v231_v44 = vsel %vm148_vm0, %v230_v43, %v229_v39  ;;  %vm447_vm0 = vcmp.lt.s32.totalorder %v446_v4, 2 }
  0xc8   :  { %v234_v45 = vsel %vm147_vm1, %v595_v10, %v231_v44  ;;  %vm238_vm1 = vweird.f32 %v595_v10 }
  0xc9   :  { %521 = vcosq.f32 %v234_v45 }
  0xca   :  { %523 = vsinq.f32 %v234_v45 }
  0xcc   :  { %v518_v48 = vpop.eup %517 }
  0xcd   :  { %v520_v49 = vpop.eup %519  ;;  %v142_v51 = vxor.u32 2147483648, %v518_v48 }
  0xce   :  { %v139_v53 = vxor.u32 2147483648, %v520_v49 }
  0xcf   :  { %v143_v17 = vsel %vm141_vm3, %v142_v51, %v520_v49  ;;  %v350_v54 = vsel %vm348_vm4, %v142_v51, %v520_v49 }
  0xd0   :  { %v140_v55 = vsel %vm138_vm5, %v518_v48, %v139_v53  ;;  %v347_v56 = vsel %vm345_vm6, %v518_v48, %v139_v53 }
  0xd1   :  { %v144_v58 = vsel %vm137_vm7, %v140_v55, %v143_v17  ;;  %v351_v59 = vsel %vm344_vm8, %v347_v56, %v350_v54 }
  0xd2   :  { %v145_v61 = vsel %vm134_vm9, nan, %v144_v58  ;;  %v352_v62 = vsel %vm134_vm9, nan, %v351_v59 }
  0xd3   :  { %v456_v63 = vsel %vm649_vm2, %v145_v61, %v352_v62 }
  0xd4   :  { %v460_v2 = vadd.f32 %v458_v60, %v456_v63 }
  0xd6   :  { %463 = vst.msk [vmem:[#allocation4] sm:$0xff] %vm462_vm10, %v460_v2  ;;  %v522_v7 = vpop.eup %521 }
  0xd7   :  { %v524_v5 = vpop.eup %523  ;;  %v246_v8 = vxor.u32 2147483648, %v522_v7 }
  0xd8   :  { %v243_v9 = vxor.u32 2147483648, %v524_v5 }
  0xd9   :  { %v247_v11 = vsel %vm245_vm11, %v246_v8, %v524_v5  ;;  %v453_v12 = vsel %vm451_vm12, %v246_v8, %v524_v5 }
  0xda   :  { %v244_v13 = vsel %vm242_vm13, %v522_v7, %v243_v9  ;;  %v450_v14 = vsel %vm448_vm14, %v522_v7, %v243_v9 }
  0xdb   :  { %v248_v15 = vsel %vm241_vm15, %v244_v13, %v247_v11  ;;  %v454_v16 = vsel %vm447_vm0, %v450_v14, %v453_v12 }
  0xdc   :  { %v249_v19 = vsel %vm238_vm1, nan, %v248_v15  ;;  %v455_v20 = vsel %vm238_vm1, nan, %v454_v16 }
  0xdd   :  { %v457_v21 = vsel %vm649_vm2, %v249_v19, %v455_v20 }
  0xde   :  { %v461_v23 = vadd.f32 %v459_v18, %v457_v21 }
  0xe0   :  { %464 = vst.msk [vmem:[#allocation4 + $0x8] sm:$0xff] %vm462_vm10, %v461_v23 }
  0xe1   :  { %536 = shalt.err (!%p533_p4)
}
  0xe2   :  { %s555_s25 = smov 128   ;;  %s556_s3 = smov 8  }
  0xe3   :  { %476 = dma.vmem_to_hbm [thread:$0]  %s471_s23, 256, %s674_s4, [#allocation5], %s555_s25, %s555_s25, %s556_s3  }
  0xe4   :  { %545 = dma.done.wait [#allocation5], 256  }
  0xe5   :  { %546 = vsyncadd [#allocation5], 4294967040 }
  0xe6   :  { %480 = vsyncpa [#allocation5], 1 }

</bundles_post_ra>
